<compile_context>
chip_gen: v5e
topology: v5e:2x2
jax: 0.10.0
libtpu: 0.0.40
codegen_flags: <defaults>
</compile_context>

<pallas_src>
import jax
import jax.numpy as jnp
from jax.experimental import pallas as pl
from jax.experimental.pallas import tpu as pltpu

_BN_EPS = 1e-5
_LANE = 128
_VMEM_BUDGET = 36 * 1024 * 1024   # working-set target (fits v7x 64 MiB VMEM/TC)
_VMEM_LIMIT = 48 * 1024 * 1024


def _round_up(x, m):
    return (x + m - 1) // m * m


# ----------------------------------------------------------------------------
# Pallas kernels
# ----------------------------------------------------------------------------
def _conv_stats_kernel(p_ref, w_ref, y_ref, stat_ref):
    """Pass 1: bf16 matmul (f32 acc) + per-tile partial BN moments."""
    y = jnp.dot(p_ref[...], w_ref[...], preferred_element_type=jnp.float32)
    y_ref[...] = y
    # Partial sum / sum-of-squares per channel; padded (zero) rows contribute 0.
    stat_ref[0, 0:1, :] = jnp.sum(y, axis=0, keepdims=True)
    stat_ref[0, 1:2, :] = jnp.sum(y * y, axis=0, keepdims=True)


def _make_bn_epilogue_kernel(apply_relu: bool, has_residual: bool):
    """Pass 2: y * scale + shift (+ residual) (+ ReLU), all in f32."""
    def kernel(y_ref, scale_ref, shift_ref, *rest):
        if has_residual:
            r_ref, o_ref = rest
        else:
            (o_ref,) = rest
        out = y_ref[...] * scale_ref[...] + shift_ref[...]
        if has_residual:
            out = out + r_ref[...]
        if apply_relu:
            out = jnp.maximum(out, 0.0)
        o_ref[...] = out
    return kernel


# ----------------------------------------------------------------------------
# Wrapper glue
# ----------------------------------------------------------------------------
def _im2col(x_nhwc, k, stride, pad):
    # TODO(synk): eliminate the 9x im2col HBM blowup by DMA-ing strided NHWC
    # windows directly inside the kernel (grid over kh*kw reduction).
    n, h, w, c = x_nhwc.shape
    h_out = (h + 2 * pad - k) // stride + 1
    w_out = (w + 2 * pad - k) // stride + 1
    xp = jnp.pad(x_nhwc, ((0, 0), (pad, pad), (pad, pad), (0, 0)))
    cols = []
    for di in range(k):
        for dj in range(k):
            cols.append(
                xp[:,
                   di:di + stride * (h_out - 1) + 1:stride,
                   dj:dj + stride * (w_out - 1) + 1:stride,
                   :]
            )
    # [N, Ho, Wo, k*k, C] -> [N*Ho*Wo, k*k*C]   (ordering: kh, kw, Cin)
    p = jnp.stack(cols, axis=3)
    return p.reshape(n * h_out * w_out, k * k * c), h_out, w_out


def _pick_tm(m, k_pad, c_pad, has_residual):
    # Per-row VMEM footprint: pass 1 = double-buffered bf16 patch tile + f32 y
    # tile; pass 2 = f32 y + (residual) + output tiles (double-buffered).
    per_row_p1 = 2 * (k_pad * 2 + c_pad * 4)
    per_row_p2 = 2 * ((3 if has_residual else 2) * c_pad * 4)
    per_row = max(per_row_p1, per_row_p2)
    resident = 2 * k_pad * c_pad * 2 + 8 * c_pad * 4   # weights + scale/shift/stats
    cap = max(_LANE, (_VMEM_BUDGET - resident) // max(per_row, 1))
    tm = min(1024, cap, _round_up(m, _LANE))
    return max(_LANE, (tm // _LANE) * _LANE)


def _conv_bn(x_nhwc, w_oihw, gamma, beta, stride, pad, *,
             apply_relu=False, residual=None):
    """Conv (as tiled matmul) + training-mode BN [+ residual] [+ ReLU]."""
    c_out, c_in, kh, kw = w_oihw.shape
    patches, h_out, w_out = _im2col(x_nhwc, kh, stride, pad)
    m, k = patches.shape

    k_pad = _round_up(k, 16)          # bf16 sublane packing
    c_pad = _round_up(c_out, _LANE)   # lane-dense MXU / store width
    has_res = residual is not None
    tm = _pick_tm(m, k_pad, c_pad, has_res)
    m_pad = _round_up(m, tm)
    gm = m_pad // tm

    # bf16 matmul operands (zero padding is inert for both matmul and stats).
    p = jnp.pad(patches.astype(jnp.bfloat16),
                ((0, m_pad - m), (0, k_pad - k)))
    w_flat = jnp.transpose(w_oihw, (2, 3, 1, 0)).reshape(kh * kw * c_in, c_out)
    w = jnp.pad(w_flat.astype(jnp.bfloat16),
                ((0, k_pad - k), (0, c_pad - c_out)))

    cparams = pltpu.CompilerParams(
        dimension_semantics=("parallel",),
        vmem_limit_bytes=_VMEM_LIMIT,
    )

    # -------- Pass 1: conv-as-matmul, stage y (f32) + per-tile moments -------
    cost1 = pl.CostEstimate(
        flops=2 * m_pad * k_pad * c_pad,
        transcendentals=0,
        bytes_accessed=(m_pad * k_pad * 2 + k_pad * c_pad * 2
                        + m_pad * c_pad * 4 + gm * 2 * c_pad * 4),
    )
    y, part = pl.pallas_call(
        _conv_stats_kernel,
        out_shape=(jax.ShapeDtypeStruct((m_pad, c_pad), jnp.float32),
                   jax.ShapeDtypeStruct((gm, 2, c_pad), jnp.float32)),
        grid=(gm,),
        in_specs=[pl.BlockSpec((tm, k_pad), lambda i: (i, 0)),
                  pl.BlockSpec((k_pad, c_pad), lambda i: (0, 0))],
        out_specs=[pl.BlockSpec((tm, c_pad), lambda i: (i, 0)),
                   pl.BlockSpec((1, 2, c_pad), lambda i: (i, 0, 0))],
        compiler_params=cparams,
        cost_estimate=cost1,
    )(p, w)

    # -------- Tiny cross-tile reduction + BN coefficient prep (in JAX) -------
    tot = jnp.sum(part, axis=0)                      # (2, c_pad)
    mean = tot[0] / m                                # true M, not padded
    var = jnp.maximum(tot[1] / m - mean * mean, 0.0)
    g = jnp.pad(gamma.astype(jnp.float32), (0, c_pad - c_out))
    b = jnp.pad(beta.astype(jnp.float32), (0, c_pad - c_out))
    scale = (g * jax.lax.rsqrt(var + _BN_EPS)).reshape(1, c_pad)
    shift = (b - mean * scale[0]).reshape(1, c_pad)

    # -------- Pass 2: normalize + gamma/beta [+ residual] [+ ReLU] -----------
    inputs = [y, scale, shift]
    in_specs = [pl.BlockSpec((tm, c_pad), lambda i: (i, 0)),
                pl.BlockSpec((1, c_pad), lambda i: (0, 0)),
                pl.BlockSpec((1, c_pad), lambda i: (0, 0))]
    if has_res:
        r = jnp.pad(residual.astype(jnp.float32),
                    ((0, m_pad - m), (0, c_pad - c_out)))
        inputs.append(r)
        in_specs.append(pl.BlockSpec((tm, c_pad), lambda i: (i, 0)))

    out = pl.pallas_call(
        _make_bn_epilogue_kernel(apply_relu, has_res),
        out_shape=jax.ShapeDtypeStruct((m_pad, c_pad), jnp.float32),
        grid=(gm,),
        in_specs=in_specs,
        out_specs=pl.BlockSpec((tm, c_pad), lambda i: (i, 0)),
        compiler_params=cparams,
    )(*inputs)

    return out[:m, :c_out], h_out, w_out


# ----------------------------------------------------------------------------
# BasicBlock forward (matches the PyTorch module, training-mode BatchNorm)
# ----------------------------------------------------------------------------
def basic_block_forward(x_nchw, params, stride):
    x = jnp.transpose(x_nchw, (0, 2, 3, 1))  # NCHW -> NHWC
    n, h, w, c_in = x.shape
    c_out = params["w1"].shape[0]

    # Shortcut path.
    if stride != 1 or c_in != c_out:
        shortcut, _, _ = _conv_bn(
            x, params["w_sc"], params["g_sc"], params["b_sc"],
            stride, 0, apply_relu=False)
    else:
        shortcut = x.reshape(n * h * w, c_in).astype(jnp.float32)

    # Left path: conv3x3(stride) -> BN -> ReLU
    o1, h_out, w_out = _conv_bn(
        x, params["w1"], params["g1"], params["b1"],
        stride, 1, apply_relu=True)
    o1_nhwc = o1.reshape(n, h_out, w_out, c_out)

    # Left path: conv3x3(1) -> BN, then (+shortcut) and final ReLU fused.
    o2, _, _ = _conv_bn(
        o1_nhwc, params["w2"], params["g2"], params["b2"],
        1, 1, apply_relu=True, residual=shortcut)

    out = o2.reshape(n, h_out, w_out, c_out)
    return jnp.transpose(out, (0, 3, 1, 2))  # NHWC -> NCHW


# ----------------------------------------------------------------------------
# Pure-JAX reference (sanity check)
# ----------------------------------------------------------------------------
def _ref_conv(x, w, stride, pad):
    return jax.lax.conv_general_dilated(
        x, w, (stride, stride), ((pad, pad), (pad, pad)),
        dimension_numbers=("NCHW", "OIHW", "NCHW"),
        precision=jax.lax.Precision.HIGHEST)


def _ref_bn(y, gamma, beta):
    mean = jnp.mean(y, axis=(0, 2, 3), keepdims=True)
    var = jnp.mean(jnp.square(y - mean), axis=(0, 2, 3), keepdims=True)
    yn = (y - mean) * jax.lax.rsqrt(var + _BN_EPS)
    return yn * gamma.reshape(1, -1, 1, 1) + beta.reshape(1, -1, 1, 1)


def _ref_basic_block(x, p, stride):
    c_in, c_out = x.shape[1], p["w1"].shape[0]
    o = _ref_bn(_ref_conv(x, p["w1"], stride, 1), p["g1"], p["b1"])
    o = jnp.maximum(o, 0.0)
    o = _ref_bn(_ref_conv(o, p["w2"], 1, 1), p["g2"], p["b2"])
    if stride != 1 or c_in != c_out:
        sc = _ref_bn(_ref_conv(x, p["w_sc"], stride, 0), p["g_sc"], p["b_sc"])
    else:
        sc = x
    return jnp.maximum(o + sc, 0.0)


# ----------------------------------------------------------------------------
if __name__ == "__main__":
    key = jax.random.PRNGKey(0)
    n, c_in, hh, ww = 2, 4, 16, 16
    c_out, stride = 8, 2  # stride=2 / channel change exercises the conv shortcut

    ks = jax.random.split(key, 8)
    x = jax.random.normal(ks[0], (n, c_in, hh, ww), jnp.float32)
    params = {
        "w1": jax.random.normal(ks[1], (c_out, c_in, 3, 3), jnp.float32) * 0.1,
        "g1": 1.0 + 0.1 * jax.random.normal(ks[2], (c_out,), jnp.float32),
        "b1": 0.1 * jax.random.normal(ks[3], (c_out,), jnp.float32),
        "w2": jax.random.normal(ks[4], (c_out, c_out, 3, 3), jnp.float32) * 0.1,
        "g2": 1.0 + 0.1 * jax.random.normal(ks[5], (c_out,), jnp.float32),
        "b2": 0.1 * jax.random.normal(ks[6], (c_out,), jnp.float32),
        "w_sc": jax.random.normal(ks[7], (c_out, c_in, 1, 1), jnp.float32) * 0.1,
        "g_sc": jnp.ones((c_out,), jnp.float32),
        "b_sc": jnp.zeros((c_out,), jnp.float32),
    }

    out = jax.block_until_ready(basic_block_forward(x, params, stride))
    assert out.shape == (n, c_out, hh // stride, ww // stride), out.shape

    ref = jax.block_until_ready(_ref_basic_block(x, params, stride))
    max_err = float(jnp.max(jnp.abs(out - ref)))
    # bf16 matmul operands vs f32 HIGHEST reference -> allow a looser tolerance.
    assert max_err < 5e-2, f"mismatch vs reference: {max_err}"

    print("KERNEL_OK")
</pallas_src>

<mosaic_0001>
module attributes {stable_mosaic.version = 11 : i64} {
  func.func @_conv_stats_kernel(%arg0: i32, %arg1: memref<128x16xbf16, #tpu.memory_space<vmem>>, %arg2: memref<16x128xbf16, #tpu.memory_space<vmem>>, %arg3: memref<128x128xf32, #tpu.memory_space<vmem>>, %arg4: memref<1x2x128xf32, #tpu.memory_space<vmem>>) attributes {dimension_semantics = [#tpu.dimension_semantics<parallel>], iteration_bounds = array<i64: 1>, scalar_prefetch = 0 : i64, scratch_operands = 0 : i64, tpu.core_type = #tpu.core_type<tc>, window_params = [{transform_indices = @transform_0, window_bounds = array<i64: 128, 16>}, {pipeline_mode = #tpu.pipeline_mode<synchronous>, transform_indices = @transform_1, window_bounds = array<i64: 16, 128>}, {transform_indices = @transform_2, window_bounds = array<i64: 128, 128>}, {transform_indices = @transform_3, window_bounds = array<i64: 1, 2, 128>}]} {
    %c0 = arith.constant 0 : index
    %c0_0 = arith.constant 0 : index
    %0 = vector.load %arg1[%c0, %c0_0] : memref<128x16xbf16, #tpu.memory_space<vmem>>, vector<128x16xbf16>
    %c0_1 = arith.constant 0 : index
    %c0_2 = arith.constant 0 : index
    %1 = vector.load %arg2[%c0_1, %c0_2] : memref<16x128xbf16, #tpu.memory_space<vmem>>, vector<16x128xbf16>
    %cst = arith.constant dense<0.000000e+00> : vector<128x128xf32>
    %2 = tpu.matmul %0, %1, %cst {dimension_numbers = #tpu.dot_dimension_numbers<[1], [0], [0], [1], [0, 0, 1, 1], [], []>} : vector<128x16xbf16>, vector<16x128xbf16>, vector<128x128xf32> -> vector<128x128xf32>
    %c0_3 = arith.constant 0 : index
    %c0_4 = arith.constant 0 : index
    %3 = vector.load %arg3[%c0_3, %c0_4] : memref<128x128xf32, #tpu.memory_space<vmem>>, vector<128x128xf32>
    tpu.vector_store %arg3[%c0_3, %c0_4], %2 {strides = array<i32>} : memref<128x128xf32, #tpu.memory_space<vmem>>, vector<128x128xf32>,
    %cst_5 = arith.constant dense<0.000000e+00> : vector<128xf32>
    %4 = vector.multi_reduction <add>, %2, %cst_5 [0] : vector<128x128xf32> to vector<128xf32>
    %5 = vector.shape_cast %4 : vector<128xf32> to vector<1x128xf32>
    %c0_6 = arith.constant 0 : index
    %c0_7 = arith.constant 0 : index
    %c0_8 = arith.constant 0 : index
    %6 = vector.load %arg4[%c0_6, %c0_7, %c0_8] : memref<1x2x128xf32, #tpu.memory_space<vmem>>, vector<1x1x128xf32>
    %7 = vector.shape_cast %6 : vector<1x1x128xf32> to vector<1x128xf32>
    %8 = vector.shape_cast %5 : vector<1x128xf32> to vector<1x1x128xf32>
    tpu.vector_store %arg4[%c0_6, %c0_7, %c0_8], %8 {strides = array<i32>} : memref<1x2x128xf32, #tpu.memory_space<vmem>>, vector<1x1x128xf32>,
    %9 = arith.mulf %2, %2 : vector<128x128xf32>
    %cst_9 = arith.constant dense<0.000000e+00> : vector<128xf32>
    %10 = vector.multi_reduction <add>, %9, %cst_9 [0] : vector<128x128xf32> to vector<128xf32>
    %11 = vector.shape_cast %10 : vector<128xf32> to vector<1x128xf32>
    %c0_10 = arith.constant 0 : index
    %c1 = arith.constant 1 : index
    %c0_11 = arith.constant 0 : index
    %12 = vector.load %arg4[%c0_10, %c1, %c0_11] : memref<1x2x128xf32, #tpu.memory_space<vmem>>, vector<1x1x128xf32>
    %13 = vector.shape_cast %12 : vector<1x1x128xf32> to vector<1x128xf32>
    %14 = vector.shape_cast %11 : vector<1x128xf32> to vector<1x1x128xf32>
    tpu.vector_store %arg4[%c0_10, %c1, %c0_11], %14 {strides = array<i32>} : memref<1x2x128xf32, #tpu.memory_space<vmem>>, vector<1x1x128xf32>,
    return
  }
  func.func @transform_0(%arg0: i32) -> (i32, i32) {
    %c0_i32 = arith.constant 0 : i32
    %c0_i32_0 = arith.constant 0 : i32
    return %arg0, %c0_i32 : i32, i32
  }
  func.func @transform_1(%arg0: i32) -> (i32, i32) {
    %c0_i32 = arith.constant 0 : i32
    %c0_i32_0 = arith.constant 0 : i32
    %c0_i32_1 = arith.constant 0 : i32
    return %c0_i32, %c0_i32_0 : i32, i32
  }
  func.func @transform_2(%arg0: i32) -> (i32, i32) {
    %c0_i32 = arith.constant 0 : i32
    %c0_i32_0 = arith.constant 0 : i32
    return %arg0, %c0_i32 : i32, i32
  }
  func.func @transform_3(%arg0: i32) -> (i32, i32, i32) {
    %c0_i32 = arith.constant 0 : i32
    %c0_i32_0 = arith.constant 0 : i32
    %c0_i32_1 = arith.constant 0 : i32
    return %arg0, %c0_i32, %c0_i32_0 : i32, i32, i32
  }
}

</mosaic_0001>

<bundles_post_ra>
// kernel: tpu_custom_call.1
= control target key start
LH: loop header
LB: loop body
LE: loop exit
PB: predicated region body
PF: predicated region fallthrough
CT: control target
= control target key end

     0   :  { %9 = vsyncpa [#allocation3], 0  ;;  %vm80_vm0 = vcmask 130048   ;;  %s453_s0 = inlined_call_operand.vmem [shape: bf16[128,16], index: 0, kind: input, shape index: {}]   ;;  %s454_s1 = inlined_call_operand.vmem [shape: bf16[16,128], index: 1, kind: input, shape index: {}]   ;;  %s455_s2 = inlined_call_operand.hbm [shape: f32[128,128], index: 2, kind: output, shape index: {0}]   ;;  %s456_s3 = inlined_call_operand.hbm [shape: f32[1,2,128], index: 3, kind: output, shape index: {1}]  }
   0x1   :  { %v316_v0 = vld [vmem:[%s454_s1] sm:$0xff]  ;;  %v310_v2 = vld [vmem:[%s453_s0 + $0x10] sm:$0xff] }
   0x2   :  { %v308_v1 = vld [vmem:[%s453_s0] sm:$0xff]  ;;  %112 = vmatpush.bf16.msra.mxu0 %v316_v0  ;;  %317 = vmatpush.bf16.msra.mxu1 %v316_v0  ;;  %v314_v4 = vld [vmem:[%s453_s0 + $0x30] sm:$0xff] }
   0x3   :  { %v312_v3 = vld [vmem:[%s453_s0 + $0x20] sm:$0xff]  ;;  %318 = vmatpush.bf16.msra.mxu2 %v316_v0  ;;  %319 = vmatpush.bf16.msra.mxu3 %v316_v0 }
   0x4   :  { %10 = vsyncpa [#allocation5], 0  ;;  %v309_v5 = vld [vmem:[%s453_s0 + $0x8] sm:$0xff]  ;;  %v311_v6 = vld [vmem:[%s453_s0 + $0x18] sm:$0xff]  ;;  %s236_s5 = sshll.u32 %s455_s2, 4  ;;  %s377_s6 = smov 128   ;;  %s237_s5 = int_to_ptr.hbm [resolvable:$true] %s236_s5 }
   0x5   :  { %300 = vmatmul.msk.bf16.vlgmr.msra.gmra.mxu0 %vm80_vm0, %v308_v1  ;;  %302 = vmatmul.msk.bf16.vlgmr.msra.gmra.mxu1 %vm80_vm0, %v310_v2  ;;  %v313_v7 = vld [vmem:[%s453_s0 + $0x28] sm:$0xff]  ;;  %v315_v8 = vld [vmem:[%s453_s0 + $0x38] sm:$0xff]  ;;  %s376_s0 = smov [#allocation2]   ;;  %s378_s7 = smov 8  }
   0x6   :  { %304 = vmatmul.msk.bf16.vlgmr.msra.gmra.mxu2 %vm80_vm0, %v312_v3  ;;  %306 = vmatmul.msk.bf16.vlgmr.msra.gmra.mxu3 %vm80_vm0, %v314_v4  ;;  %s234_s29 = sshll.u32 %s376_s0, 4  ;;  %s379_s2 = smov [#allocation4]   ;;  %s235_s29 = int_to_ptr.vmem [resolvable:$true] %s234_s29 }
   0x7   :  { %s248_s8 = sshll.u32 %s379_s2, 4  ;;  %s250_s11 = sshll.u32 %s456_s3, 4  ;;  %s249_s8 = int_to_ptr.vmem [resolvable:$true] %s248_s8  ;;  %s251_s11 = int_to_ptr.hbm [resolvable:$true] %s250_s11 }
  0x15   :  { %301 = vmatmul.msk.bf16.gmra.mxu0 %vm80_vm0, %v309_v5  ;;  %303 = vmatmul.msk.bf16.gmra.mxu1 %vm80_vm0, %v311_v6 }
  0x16   :  { %305 = vmatmul.msk.bf16.gmra.mxu2 %vm80_vm0, %v313_v7  ;;  %307 = vmatmul.msk.bf16.gmra.mxu3 %vm80_vm0, %v315_v8 }
  0x82   :  { %v114_v9 = vpop.f32.mrf.mxu0  ;;  %v124_v10 = vpop.f32.mrf.mxu1 }
  0x83   :  { %154 = vst [vmem:[#allocation2] sm:$0xff] %v114_v9  ;;  %v192_v20 = vmul.f32 %v114_v9, %v114_v9  ;;  %v196_v32 = vmul.f32 %v124_v10, %v124_v10 }
  0x84   :  { %158 = vst [vmem:[#allocation2 + $0x20] sm:$0xff] %v124_v10 }
  0x89   :  { %v134_v11 = vpop.f32.mrf.mxu2  ;;  %v435_v12 = vpop.f32.mrf.mxu3 }
  0x8a   :  { %v116_v13 = vpop.f32.mrf.mxu0  ;;  %v126_v14 = vpop.f32.mrf.mxu1  ;;  %162 = vst [vmem:[#allocation2 + $0x40] sm:$0xff] %v134_v11  ;;  %v200_v46 = vmul.f32 %v134_v11, %v134_v11  ;;  %v204_v58 = vmul.f32 %v435_v12, %v435_v12 }
  0x8b   :  { %155 = vst [vmem:[#allocation2 + $0x8] sm:$0xff] %v116_v13  ;;  %v193_v19 = vmul.f32 %v116_v13, %v116_v13  ;;  %v170_v21 = vadd.f32 %v116_v13, %v114_v9  ;;  %v197_v35 = vmul.f32 %v126_v14, %v126_v14 }
  0x8c   :  { %159 = vst [vmem:[#allocation2 + $0x28] sm:$0xff] %v126_v14 }
  0x8d   :  { %166 = vst [vmem:[#allocation2 + $0x60] sm:$0xff] %v435_v12  ;;  %v208_v23 = vadd.f32 %v193_v19, %v192_v20 }
  0x91   :  { %v136_v15 = vpop.f32.mrf.mxu2  ;;  %v438_v16 = vpop.f32.mrf.mxu3 }
  0x92   :  { %v119_v17 = vpop.f32.mrf.mxu0  ;;  %v129_v18 = vpop.f32.mrf.mxu1  ;;  %163 = vst [vmem:[#allocation2 + $0x48] sm:$0xff] %v136_v15  ;;  %v201_v49 = vmul.f32 %v136_v15, %v136_v15  ;;  %v205_v61 = vmul.f32 %v438_v16, %v438_v16 }
  0x93   :  { %156 = vst [vmem:[#allocation2 + $0x10] sm:$0xff] %v119_v17  ;;  %v194_v22 = vmul.f32 %v119_v17, %v119_v17  ;;  %v171_v24 = vadd.f32 %v170_v21, %v119_v17  ;;  %v198_v38 = vmul.f32 %v129_v18, %v129_v18 }
  0x94   :  { %160 = vst [vmem:[#allocation2 + $0x30] sm:$0xff] %v129_v18 }
  0x95   :  { %167 = vst [vmem:[#allocation2 + $0x68] sm:$0xff] %v438_v16  ;;  %v209_v29 = vadd.f32 %v208_v23, %v194_v22 }
  0x99   :  { %v139_v25 = vpop.f32.mrf.mxu2  ;;  %v149_v26 = vpop.f32.mrf.mxu3 }
  0x9a   :  { %v121_v27 = vpop.f32.mrf.mxu0  ;;  %v131_v28 = vpop.f32.mrf.mxu1  ;;  %164 = vst [vmem:[#allocation2 + $0x50] sm:$0xff] %v139_v25  ;;  %v202_v53 = vmul.f32 %v139_v25, %v139_v25  ;;  %v206_v1 = vmul.f32 %v149_v26, %v149_v26 }
  0x9b   :  { %157 = vst [vmem:[#allocation2 + $0x18] sm:$0xff] %v121_v27  ;;  %v172_v30 = vadd.f32 %v171_v24, %v121_v27  ;;  %v195_v31 = vmul.f32 %v121_v27, %v121_v27  ;;  %v199_v44 = vmul.f32 %v131_v28, %v131_v28 }
  0x9c   :  { %161 = vst [vmem:[#allocation2 + $0x38] sm:$0xff] %v131_v28 }
  0x9d   :  { %v173_v33 = vadd.f32 %v172_v30, %v124_v10  ;;  %v210_v34 = vadd.f32 %v209_v29, %v195_v31  ;;  %168 = vst [vmem:[#allocation2 + $0x70] sm:$0xff] %v149_v26 }
  0x9f   :  { %v211_v36 = vadd.f32 %v210_v34, %v196_v32  ;;  %v174_v37 = vadd.f32 %v173_v33, %v126_v14 }
  0xa1   :  { %v175_v39 = vadd.f32 %v174_v37, %v129_v18  ;;  %v212_v40 = vadd.f32 %v211_v36, %v197_v35  ;;  %v141_v41 = vpop.f32.mrf.mxu2  ;;  %v151_v42 = vpop.f32.mrf.mxu3 }
  0xa2   :  { %165 = vst [vmem:[#allocation2 + $0x58] sm:$0xff] %v141_v41  ;;  %v203_v57 = vmul.f32 %v141_v41, %v141_v41  ;;  %v207_v5 = vmul.f32 %v151_v42, %v151_v42 }
  0xa3   :  { %v176_v43 = vadd.f32 %v175_v39, %v131_v28  ;;  %v213_v45 = vadd.f32 %v212_v40, %v198_v38  ;;  %169 = vst [vmem:[#allocation2 + $0x78] sm:$0xff] %v151_v42 }
  0xa4   :  { %242 = dma.vmem_to_hbm [thread:$0]  %s235_s29, 2048, %s237_s5, [#allocation3], %s377_s6, %s377_s6, %s378_s7  }
  0xa5   :  { %v177_v47 = vadd.f32 %v176_v43, %v134_v11  ;;  %v214_v48 = vadd.f32 %v213_v45, %v199_v44 }
  0xa7   :  { %v215_v50 = vadd.f32 %v214_v48, %v200_v46  ;;  %v178_v51 = vadd.f32 %v177_v47, %v136_v15 }
  0xa9   :  { %v179_v52 = vadd.f32 %v178_v51, %v139_v25  ;;  %v216_v54 = vadd.f32 %v215_v50, %v201_v49 }
  0xab   :  { %v217_v55 = vadd.f32 %v216_v54, %v202_v53  ;;  %v180_v56 = vadd.f32 %v179_v52, %v141_v41 }
  0xad   :  { %v181_v59 = vadd.f32 %v180_v56, %v435_v12  ;;  %v218_v60 = vadd.f32 %v217_v55, %v203_v57 }
  0xaf   :  { %v219_v62 = vadd.f32 %v218_v60, %v204_v58  ;;  %v182_v63 = vadd.f32 %v181_v59, %v438_v16 }
  0xb1   :  { %v183_v0 = vadd.f32 %v182_v63, %v149_v26  ;;  %v220_v2 = vadd.f32 %v219_v62, %v205_v61 }
  0xb3   :  { %v221_v3 = vadd.f32 %v220_v2, %v206_v1  ;;  %v184_v4 = vadd.f32 %v183_v0, %v151_v42 }
  0xb5   :  { %v185_v6 = vrot.slane %v184_v4, 4  ;;  %v222_v7 = vadd.f32 %v221_v3, %v207_v5 }
  0xb7   :  { %v186_v8 = vadd.f32 %v185_v6, %v184_v4  ;;  %v223_v9 = vrot.slane %v222_v7, 4 }
  0xb9   :  { %v187_v10 = vrot.slane %v186_v8, 2  ;;  %v224_v11 = vadd.f32 %v223_v9, %v222_v7 }
  0xbb   :  { %v188_v12 = vadd.f32 %v187_v10, %v186_v8  ;;  %v225_v13 = vrot.slane %v224_v11, 2 }
  0xbd   :  { %v189_v14 = vrot.slane %v188_v12, 1  ;;  %v226_v15 = vadd.f32 %v225_v13, %v224_v11 }
  0xbf   :  { %v190_v16 = vadd.f32 %v189_v14, %v188_v12  ;;  %v227_v17 = vrot.slane %v226_v15, 1 }
  0xc1   :  { %191 = vst [vmem:[#allocation4] sm:$0x1] %v190_v16  ;;  %v228_v18 = vadd.f32 %v227_v17, %v226_v15 }
  0xc3   :  { %229 = vst [vmem:[#allocation4 + $0x1] sm:$0x1] %v228_v18 }
  0xc4   :  { %253 = dma.vmem_to_hbm [thread:$0]  %s249_s8, 32, %s251_s11, [#allocation5]  }
  0xc5   :  { %372 = dma.done.wait [#allocation3], 2048  }
  0xc6   :  { %373 = vsyncadd [#allocation3], 4294965248 }
  0xc7   :  { %374 = dma.done.wait [#allocation5], 32  }
  0xc8   :  { %375 = vsyncadd [#allocation5], 4294967264 }
  0xc9   :  { %262 = vsyncpa [#allocation3], 1 }
  0xca   :  { %263 = vsyncpa [#allocation5], 1 }

</bundles_post_ra>
